<compile_context>
chip_gen: v7x
topology: tpu7x:2x2x1
jax: 0.10.0
libtpu: 0.0.40
codegen_flags: <defaults>
</compile_context>

<pallas_src>
import functools

import numpy as np
import jax
import jax.numpy as jnp
from jax import lax
from jax.experimental import pallas as pl
from jax.experimental.pallas import tpu as pltpu


def _stride2_select(n_in, n_out, K, P):
    """M[k] (n_out, n_in): M[k][o, i] = 1 iff i == 2*o + k - P and 0 <= i < n_in.

    Out-of-range taps map to an all-zero row/column, reproducing the
    zero-padding semantics of F.pad (padded zeros participate in the max).
    """
    m = np.zeros((K, n_out, n_in), dtype=np.float32)
    for k in range(K):
        for o in range(n_out):
            i = 2 * o + k - P
            if 0 <= i < n_in:
                m[k, o, i] = 1.0
    return m


def _maxpool_kernel(x_ref, sw_ref, sh_ref, o_ref, *, K):
    BC = x_ref.shape[0]
    W, Wo = sw_ref.shape[1], sw_ref.shape[2]
    Ho, H = sh_ref.shape[1], sh_ref.shape[2]

    x = x_ref[...].astype(jnp.float32)                          # (BC, H, W)

    # ---- width pass: zero-pad + shift + stride-2 selection, max over dx ----
    def w_tap(dx):
        swb = jnp.broadcast_to(sw_ref[dx], (BC, W, Wo))
        return jnp.einsum('bhw,bwv->bhv', x, swb,
                          preferred_element_type=jnp.float32)   # (BC, H, Wo)

    wm = w_tap(0)
    for dx in range(1, K):
        wm = jnp.maximum(wm, w_tap(dx))

    # ---- height pass: same trick on the sublane axis, max over dy ----------
    def h_tap(dy):
        shb = jnp.broadcast_to(sh_ref[dy], (BC, Ho, H))
        return jnp.einsum('boh,bhv->bov', shb, wm,
                          preferred_element_type=jnp.float32)   # (BC, Ho, Wo)

    out = h_tap(0)
    for dy in range(1, K):
        out = jnp.maximum(out, h_tap(dy))

    o_ref[...] = out.astype(o_ref.dtype)


def maxpool_forward(x, *, kernel_size, block_bytes=2 << 20):
    """Pallas MaxPool forward.  x: (N, C, H, W) NCHW, zero-pad P, KxK, stride 2."""
    N, C, H, W = x.shape
    K = int(kernel_size)
    P = (K - 1) // 2
    Ho = (H + 2 * P - K) // 2 + 1
    Wo = (W + 2 * P - K) // 2 + 1
    NC = N * C

    SW = jnp.asarray(np.transpose(_stride2_select(W, Wo, K, P), (0, 2, 1)))  # (K, W, Wo)
    SH = jnp.asarray(_stride2_select(H, Ho, K, P))                           # (K, Ho, H)

    # Planes (flattened N*C) per grid step: largest divisor of N*C whose f32
    # input block stays under the VMEM budget (pipeline double-buffers it).
    plane_bytes = H * W * 4
    BC = 1
    for d in range(1, NC + 1):
        if NC % d == 0 and d * plane_bytes <= block_bytes:
            BC = d

    x3 = x.reshape(NC, H, W)
    kernel = functools.partial(_maxpool_kernel, K=K)
    out3 = pl.pallas_call(
        kernel,
        out_shape=jax.ShapeDtypeStruct((NC, Ho, Wo), x.dtype),
        grid=(NC // BC,),
        in_specs=[
            pl.BlockSpec((BC, H, W), lambda i: (i, 0, 0)),
            pl.BlockSpec((K, W, Wo), lambda i: (0, 0, 0)),
            pl.BlockSpec((K, Ho, H), lambda i: (0, 0, 0)),
        ],
        out_specs=pl.BlockSpec((BC, Ho, Wo), lambda i: (i, 0, 0)),
        compiler_params=pltpu.CompilerParams(
            dimension_semantics=("parallel",)),
    )(x3, SW, SH)
    return out3.reshape(N, C, Ho, Wo)


def _reference(x, kernel_size):
    """Pure-JAX reference: zero-pad by P, then KxK max pool with stride 2."""
    K = kernel_size
    P = (K - 1) // 2
    xp = jnp.pad(x, ((0, 0), (0, 0), (P, P), (P, P)))
    return lax.reduce_window(
        xp, -jnp.inf, lax.max,
        window_dimensions=(1, 1, K, K),
        window_strides=(1, 1, 2, 2),
        padding="VALID")


if __name__ == "__main__":
    N, C, H, W = 2, 4, 16, 16
    key = jax.random.PRNGKey(0)
    x = jax.random.normal(key, (N, C, H, W), jnp.float32)

    for K in (3, 2):   # odd kernel (pad 1) and even kernel (pad 0)
        y = maxpool_forward(x, kernel_size=K)
        y = jax.block_until_ready(y)
        y_ref = _reference(x, K)
        assert y.shape == y_ref.shape, (y.shape, y_ref.shape)
        err = float(jnp.max(jnp.abs(y - y_ref)))
        assert err < 1e-5, f"K={K}: max abs err {err}"

    print("KERNEL_OK")
</pallas_src>

<mosaic_0001>
module attributes {stable_mosaic.version = 11 : i64} {
  func.func @_maxpool_kernel(%arg0: i32, %arg1: memref<8x16x16xf32, #tpu.memory_space<vmem>>, %arg2: memref<3x16x8xf32, #tpu.memory_space<vmem>>, %arg3: memref<3x8x16xf32, #tpu.memory_space<vmem>>, %arg4: memref<8x8x8xf32, #tpu.memory_space<vmem>>) attributes {dimension_semantics = [#tpu.dimension_semantics<parallel>], iteration_bounds = array<i64: 1>, scalar_prefetch = 0 : i64, scratch_operands = 0 : i64, tpu.core_type = #tpu.core_type<tc>, window_params = [{transform_indices = @transform_0, window_bounds = array<i64: 8, 16, 16>}, {pipeline_mode = #tpu.pipeline_mode<synchronous>, transform_indices = @transform_1, window_bounds = array<i64: 3, 16, 8>}, {pipeline_mode = #tpu.pipeline_mode<synchronous>, transform_indices = @transform_2, window_bounds = array<i64: 3, 8, 16>}, {transform_indices = @transform_3, window_bounds = array<i64: 8, 8, 8>}]} {
    %c0 = arith.constant 0 : index
    %c0_0 = arith.constant 0 : index
    %c0_1 = arith.constant 0 : index
    %0 = vector.load %arg1[%c0, %c0_0, %c0_1] : memref<8x16x16xf32, #tpu.memory_space<vmem>>, vector<8x16x16xf32>
    %c0_2 = arith.constant 0 : index
    %c0_3 = arith.constant 0 : index
    %c0_4 = arith.constant 0 : index
    %1 = vector.load %arg2[%c0_2, %c0_3, %c0_4] : memref<3x16x8xf32, #tpu.memory_space<vmem>>, vector<1x16x8xf32>
    %2 = vector.shape_cast %1 : vector<1x16x8xf32> to vector<16x8xf32>
    %3 = vector.shape_cast %2 : vector<16x8xf32> to vector<1x16x8xf32>
    %4 = vector.broadcast %3 : vector<1x16x8xf32> to vector<8x16x8xf32>
    "tpu.trace_start"() <{level = 10 : i32, message = "bhw,bwv->bhv"}> : () -> ()
    %cst = arith.constant dense<0.000000e+00> : vector<8x16x8xf32>
    %5 = tpu.matmul %0, %4, %cst {dimension_numbers = #tpu.dot_dimension_numbers<[2], [1], [1], [2], [0, 0, 0, 1, 1, 2], [0], [0]>} : vector<8x16x16xf32>, vector<8x16x8xf32>, vector<8x16x8xf32> -> vector<8x16x8xf32>
    "tpu.trace_stop"() : () -> ()
    %c1 = arith.constant 1 : index
    %c0_5 = arith.constant 0 : index
    %c0_6 = arith.constant 0 : index
    %6 = vector.load %arg2[%c1, %c0_5, %c0_6] : memref<3x16x8xf32, #tpu.memory_space<vmem>>, vector<1x16x8xf32>
    %7 = vector.shape_cast %6 : vector<1x16x8xf32> to vector<16x8xf32>
    %8 = vector.shape_cast %7 : vector<16x8xf32> to vector<1x16x8xf32>
    %9 = vector.broadcast %8 : vector<1x16x8xf32> to vector<8x16x8xf32>
    "tpu.trace_start"() <{level = 10 : i32, message = "bhw,bwv->bhv"}> : () -> ()
    %cst_7 = arith.constant dense<0.000000e+00> : vector<8x16x8xf32>
    %10 = tpu.matmul %0, %9, %cst_7 {dimension_numbers = #tpu.dot_dimension_numbers<[2], [1], [1], [2], [0, 0, 0, 1, 1, 2], [0], [0]>} : vector<8x16x16xf32>, vector<8x16x8xf32>, vector<8x16x8xf32> -> vector<8x16x8xf32>
    "tpu.trace_stop"() : () -> ()
    %11 = arith.maximumf %5, %10 : vector<8x16x8xf32>
    %c2 = arith.constant 2 : index
    %c0_8 = arith.constant 0 : index
    %c0_9 = arith.constant 0 : index
    %12 = vector.load %arg2[%c2, %c0_8, %c0_9] : memref<3x16x8xf32, #tpu.memory_space<vmem>>, vector<1x16x8xf32>
    %13 = vector.shape_cast %12 : vector<1x16x8xf32> to vector<16x8xf32>
    %14 = vector.shape_cast %13 : vector<16x8xf32> to vector<1x16x8xf32>
    %15 = vector.broadcast %14 : vector<1x16x8xf32> to vector<8x16x8xf32>
    "tpu.trace_start"() <{level = 10 : i32, message = "bhw,bwv->bhv"}> : () -> ()
    %cst_10 = arith.constant dense<0.000000e+00> : vector<8x16x8xf32>
    %16 = tpu.matmul %0, %15, %cst_10 {dimension_numbers = #tpu.dot_dimension_numbers<[2], [1], [1], [2], [0, 0, 0, 1, 1, 2], [0], [0]>} : vector<8x16x16xf32>, vector<8x16x8xf32>, vector<8x16x8xf32> -> vector<8x16x8xf32>
    "tpu.trace_stop"() : () -> ()
    %17 = arith.maximumf %11, %16 : vector<8x16x8xf32>
    %c0_11 = arith.constant 0 : index
    %c0_12 = arith.constant 0 : index
    %c0_13 = arith.constant 0 : index
    %18 = vector.load %arg3[%c0_11, %c0_12, %c0_13] : memref<3x8x16xf32, #tpu.memory_space<vmem>>, vector<1x8x16xf32>
    %19 = vector.shape_cast %18 : vector<1x8x16xf32> to vector<8x16xf32>
    %20 = vector.shape_cast %19 : vector<8x16xf32> to vector<1x8x16xf32>
    %21 = vector.broadcast %20 : vector<1x8x16xf32> to vector<8x8x16xf32>
    "tpu.trace_start"() <{level = 10 : i32, message = "boh,bhv->bov"}> : () -> ()
    %cst_14 = arith.constant dense<0.000000e+00> : vector<8x8x8xf32>
    %22 = tpu.matmul %21, %17, %cst_14 {dimension_numbers = #tpu.dot_dimension_numbers<[2], [1], [1], [2], [0, 0, 0, 1, 1, 2], [0], [0]>} : vector<8x8x16xf32>, vector<8x16x8xf32>, vector<8x8x8xf32> -> vector<8x8x8xf32>
    "tpu.trace_stop"() : () -> ()
    %c1_15 = arith.constant 1 : index
    %c0_16 = arith.constant 0 : index
    %c0_17 = arith.constant 0 : index
    %23 = vector.load %arg3[%c1_15, %c0_16, %c0_17] : memref<3x8x16xf32, #tpu.memory_space<vmem>>, vector<1x8x16xf32>
    %24 = vector.shape_cast %23 : vector<1x8x16xf32> to vector<8x16xf32>
    %25 = vector.shape_cast %24 : vector<8x16xf32> to vector<1x8x16xf32>
    %26 = vector.broadcast %25 : vector<1x8x16xf32> to vector<8x8x16xf32>
    "tpu.trace_start"() <{level = 10 : i32, message = "boh,bhv->bov"}> : () -> ()
    %cst_18 = arith.constant dense<0.000000e+00> : vector<8x8x8xf32>
    %27 = tpu.matmul %26, %17, %cst_18 {dimension_numbers = #tpu.dot_dimension_numbers<[2], [1], [1], [2], [0, 0, 0, 1, 1, 2], [0], [0]>} : vector<8x8x16xf32>, vector<8x16x8xf32>, vector<8x8x8xf32> -> vector<8x8x8xf32>
    "tpu.trace_stop"() : () -> ()
    %28 = arith.maximumf %22, %27 : vector<8x8x8xf32>
    %c2_19 = arith.constant 2 : index
    %c0_20 = arith.constant 0 : index
    %c0_21 = arith.constant 0 : index
    %29 = vector.load %arg3[%c2_19, %c0_20, %c0_21] : memref<3x8x16xf32, #tpu.memory_space<vmem>>, vector<1x8x16xf32>
    %30 = vector.shape_cast %29 : vector<1x8x16xf32> to vector<8x16xf32>
    %31 = vector.shape_cast %30 : vector<8x16xf32> to vector<1x8x16xf32>
    %32 = vector.broadcast %31 : vector<1x8x16xf32> to vector<8x8x16xf32>
    "tpu.trace_start"() <{level = 10 : i32, message = "boh,bhv->bov"}> : () -> ()
    %cst_22 = arith.constant dense<0.000000e+00> : vector<8x8x8xf32>
    %33 = tpu.matmul %32, %17, %cst_22 {dimension_numbers = #tpu.dot_dimension_numbers<[2], [1], [1], [2], [0, 0, 0, 1, 1, 2], [0], [0]>} : vector<8x8x16xf32>, vector<8x16x8xf32>, vector<8x8x8xf32> -> vector<8x8x8xf32>
    "tpu.trace_stop"() : () -> ()
    %34 = arith.maximumf %28, %33 : vector<8x8x8xf32>
    %c0_23 = arith.constant 0 : index
    %c0_24 = arith.constant 0 : index
    %c0_25 = arith.constant 0 : index
    %35 = vector.load %arg4[%c0_23, %c0_24, %c0_25] : memref<8x8x8xf32, #tpu.memory_space<vmem>>, vector<8x8x8xf32>
    tpu.vector_store %arg4[%c0_23, %c0_24, %c0_25], %34 {strides = array<i32>} : memref<8x8x8xf32, #tpu.memory_space<vmem>>, vector<8x8x8xf32>,
    return
  }
  func.func @transform_0(%arg0: i32) -> (i32, i32, i32) {
    %c0_i32 = arith.constant 0 : i32
    %c0_i32_0 = arith.constant 0 : i32
    %c0_i32_1 = arith.constant 0 : i32
    return %arg0, %c0_i32, %c0_i32_0 : i32, i32, i32
  }
  func.func @transform_1(%arg0: i32) -> (i32, i32, i32) {
    %c0_i32 = arith.constant 0 : i32
    %c0_i32_0 = arith.constant 0 : i32
    %c0_i32_1 = arith.constant 0 : i32
    %c0_i32_2 = arith.constant 0 : i32
    return %c0_i32, %c0_i32_0, %c0_i32_1 : i32, i32, i32
  }
  func.func @transform_2(%arg0: i32) -> (i32, i32, i32) {
    %c0_i32 = arith.constant 0 : i32
    %c0_i32_0 = arith.constant 0 : i32
    %c0_i32_1 = arith.constant 0 : i32
    %c0_i32_2 = arith.constant 0 : i32
    return %c0_i32, %c0_i32_0, %c0_i32_1 : i32, i32, i32
  }
  func.func @transform_3(%arg0: i32) -> (i32, i32, i32) {
    %c0_i32 = arith.constant 0 : i32
    %c0_i32_0 = arith.constant 0 : i32
    %c0_i32_1 = arith.constant 0 : i32
    return %arg0, %c0_i32, %c0_i32_0 : i32, i32, i32
  }
}

</mosaic_0001>

<bundles_post_ra>
// kernel: tpu_custom_call.1
= control target key start
LH: loop header
LB: loop body
LE: loop exit
PB: predicated region body
PF: predicated region fallthrough
CT: control target
= control target key end

     0   :  { %8 = vsyncpa [#allocation3], 0  ;;  %s4855_s0 = inlined_call_operand.hbm [shape: f32[8,16,16], index: 0, kind: input, shape index: {}]   ;;  %s4856_s1 = inlined_call_operand.vmem [shape: f32[3,16,8], index: 1, kind: input, shape index: {}]   ;;  %s4857_s2 = inlined_call_operand.vmem [shape: f32[3,8,16], index: 2, kind: input, shape index: {}]   ;;  %s4858_s3 = inlined_call_operand.hbm [shape: f32[8,8,8], index: 3, kind: output, shape index: {}]  }
   0x1   :  { %9 = vsyncpa [#allocation4], 0  ;;  %s4475_s12 = smov [#allocation2]   ;;  %s4427_s16 = scalar_lea.hbm %s4855_s0, 2048 }
   0x2   :  { %s15_s13 = sshll.u32 %s4475_s12, 4  ;;  %p4428_p0 = scmp.ne.s32.totalorder %s4855_s0, %s4427_s16  ;;  %s16_s13 = int_to_ptr.vmem [resolvable:$true] %s15_s13 }
   0x3   :  { %p4431_p1 = scmp.lt.u32.totalorder %s4427_s16, %s4855_s0 }
   0x5   :  { %p4433_p2 = pnand %p4431_p1, %p4428_p0 }
   0x7   :  { %4436 = shalt.err (!%p4433_p2)
}
   0x8   :  { %s4437_s21 = scalar_lea.vmem %s16_s13, 2048  ;;  %p4442_p4 = scmp.lt.s32.totalorder %s16_s13, %s16_s13 }
   0x9   :  { %p4438_p3 = scmp.ne.s32.totalorder %s16_s13, %s4437_s21  ;;  %p4443_p5 = scmp.lt.s32.totalorder %s4437_s21, %s4437_s21 }
   0xb   :  { %p4444_p6 = por %p4443_p5, %p4442_p4 }
   0xd   :  { %p4445_p7 = pnand %p4444_p6, %p4438_p3 }
   0xf   :  { %4448 = shalt.err (!%p4445_p7)
}
  0x10   :  { %s4476_s22 = smov 128   ;;  %s4477_s23 = smov 8  }
  0x11   :  { %21 = dma.hbm_to_vmem [thread:$0]  %s4855_s0, 2048, %s16_s13, [#allocation3], %s4476_s22, %s4476_s22, %s4477_s23  }
  0x12   :  { %4471 = dma.done.wait [#allocation3], 2048  }
  0x13   :  { %4472 = vsyncadd [#allocation3], 4294965248  ;;  %vm47_vm0 = vcmask 130048   ;;  %v45_v0 = vld [vmem:[%s4856_s1] sm:$0xff]  ;;  %v46_v1 = vld [vmem:[%s4856_s1 + $0x8] sm:$0xff]  ;;  %v4478_v25 = vmov 0.0|0.0  }
  0x14   :  { %v4523_v2 = vld [vmem:[#allocation2] sm:$0xff]  ;;  %v4252_v3 = vpack.c.bf16 %v46_v1, %v45_v0  ;;  %v4527_v4 = vld [vmem:[#allocation2 + $0x10] sm:$0xff]  ;;  %v4531_v5 = vld [vmem:[#allocation2 + $0x8] sm:$0xff]  ;;  %vm4479_vm1 = vmmov 0   ;;  %v4480_v26 = vmov 0.0   ;;  %vm3644_vm2 = vcmask 64512  }
  0x15   :  { %3920 = vmatprep.mubr.msk.f32.mxu0 %vm47_vm0, %v4523_v2  ;;  %3927 = vmatprep.mubr.msk.f32.mxu1 %vm47_vm0, %v4527_v4  ;;  %v4533_v6 = vld [vmem:[#allocation2 + $0x18] sm:$0xff]  ;;  %v4535_v7 = vld [vmem:[#allocation2 + $0x20] sm:$0xff]  ;;  %v4537_v8 = vld [vmem:[#allocation2 + $0x30] sm:$0xff] }
  0x16   :  { %4253 = vmatprep.subr.bf16.mxu0 %v4252_v3  ;;  %4257 = vmatprep.subr.bf16.mxu1 %v4252_v3  ;;  %v4543_v9 = vld [vmem:[#allocation2 + $0x28] sm:$0xff]  ;;  %v4545_v10 = vld [vmem:[#allocation2 + $0x38] sm:$0xff]  ;;  %v4551_v11 = vld [vmem:[#allocation2 + $0x40] sm:$0xff] }
  0x17   :  { %4255 = vmatpush3.bf16.msra.mxu0 %v4252_v3  ;;  %4259 = vmatpush3.bf16.msra.mxu1 %v4252_v3  ;;  %v4553_v12 = vld [vmem:[#allocation2 + $0x50] sm:$0xff]  ;;  %v3687_v14 = vld [vmem:[%s4856_s1 + $0x18] sm:$0xff]  ;;  %v4565_v15 = vld [vmem:[#allocation2 + $0x48] sm:$0xff] }
  0x18   :  { %4261 = vmatprep.subr.bf16.mxu0 %v4252_v3  ;;  %4265 = vmatprep.subr.bf16.mxu1 %v4252_v3  ;;  %v3686_v13 = vld [vmem:[%s4856_s1 + $0x10] sm:$0xff]  ;;  %v4567_v16 = vld [vmem:[#allocation2 + $0x58] sm:$0xff]  ;;  %v4573_v17 = vld [vmem:[#allocation2 + $0x60] sm:$0xff] }
  0x19   :  { %v4575_v18 = vld [vmem:[#allocation2 + $0x70] sm:$0xff]  ;;  %v4284_v19 = vpack.c.bf16 %v3687_v14, %v3686_v13  ;;  %v4581_v20 = vld [vmem:[#allocation2 + $0x68] sm:$0xff]  ;;  %v4583_v21 = vld [vmem:[#allocation2 + $0x78] sm:$0xff] }
  0x1a   :  { %3921 = vmatmul.mubr.msk.f32.vlgmr.msra.gmra.mrb[0].mxu0 %vm47_vm0, %v4531_v5  ;;  %3928 = vmatmul.mubr.msk.f32.vlgmr.msra.gmra.mrb[0].mxu1 %vm47_vm0, %v4533_v6  ;;  %v3704_v22 = vld [vmem:[%s4856_s1 + $0x20] sm:$0xff]  ;;  %v3705_v23 = vld [vmem:[%s4856_s1 + $0x28] sm:$0xff] }
  0x1b   :  { %4263 = vmatpush3.bf16.msra.mxu0 %v4252_v3  ;;  %4267 = vmatpush3.bf16.msra.mxu1 %v4252_v3  ;;  %v4316_v24 = vpack.c.bf16 %v3705_v23, %v3704_v22 }
  0x1c   :  { %3934 = vmatprep.mubr.msk.f32.mxu0 %vm47_vm0, %v4535_v7  ;;  %3941 = vmatprep.mubr.msk.f32.mxu1 %vm47_vm0, %v4537_v8 }
  0x1d   :  { %4269 = vmatprep.subr.bf16.mxu0 %v4252_v3  ;;  %4273 = vmatprep.subr.bf16.mxu1 %v4252_v3 }
  0x1e   :  { %3935 = vmatmul.mubr.msk.f32.vlgmr.msra.gmra.mrb[2].mxu0 %vm47_vm0, %v4543_v9  ;;  %3942 = vmatmul.mubr.msk.f32.vlgmr.msra.gmra.mrb[2].mxu1 %vm47_vm0, %v4545_v10 }
  0x1f   :  { %4271 = vmatpush3.bf16.msra.mxu0 %v4252_v3  ;;  %4275 = vmatpush3.bf16.msra.mxu1 %v4252_v3 }
  0x20   :  { %3948 = vmatprep.mubr.msk.f32.mxu0 %vm47_vm0, %v4551_v11  ;;  %3955 = vmatprep.mubr.msk.f32.mxu1 %vm47_vm0, %v4553_v12 }
  0x21   :  { %4277 = vmatprep.subr.bf16.mxu0 %v4252_v3  ;;  %4281 = vmatprep.subr.bf16.mxu1 %v4252_v3 }
  0x22   :  { %3949 = vmatmul.mubr.msk.f32.vlgmr.msra.gmra.mrb[4].mxu0 %vm47_vm0, %v4565_v15  ;;  %3956 = vmatmul.mubr.msk.f32.vlgmr.msra.gmra.mrb[4].mxu1 %vm47_vm0, %v4567_v16 }
  0x23   :  { %4279 = vmatpush3.bf16.msra.mxu0 %v4252_v3  ;;  %4283 = vmatpush3.bf16.msra.mxu1 %v4252_v3 }
  0x24   :  { %3962 = vmatprep.mubr.msk.f32.mxu0 %vm47_vm0, %v4573_v17  ;;  %3969 = vmatprep.mubr.msk.f32.mxu1 %vm47_vm0, %v4575_v18 }
  0x25   :  { %4285 = vmatprep.subr.bf16.mxu0 %v4284_v19  ;;  %4289 = vmatprep.subr.bf16.mxu1 %v4284_v19 }
  0x26   :  { %3963 = vmatmul.mubr.msk.f32.vlgmr.msra.gmra.mrb[6].mxu0 %vm47_vm0, %v4581_v20  ;;  %3970 = vmatmul.mubr.msk.f32.vlgmr.msra.gmra.mrb[6].mxu1 %vm47_vm0, %v4583_v21 }
  0x27   :  { %4287 = vmatpush3.bf16.msra.mxu0 %v4284_v19  ;;  %4291 = vmatpush3.bf16.msra.mxu1 %v4284_v19 }
  0x28   :  { %3976 = vmatprep.mubr.msk.f32.mxu0 %vm47_vm0, %v4523_v2  ;;  %3983 = vmatprep.mubr.msk.f32.mxu1 %vm47_vm0, %v4527_v4 }
  0x29   :  { %4293 = vmatprep.subr.bf16.mxu0 %v4284_v19  ;;  %4297 = vmatprep.subr.bf16.mxu1 %v4284_v19 }
  0x2a   :  { %3977 = vmatmul.mubr.msk.f32.vlgmr.msra.gmra.mrb[8].mxu0 %vm47_vm0, %v4531_v5  ;;  %3984 = vmatmul.mubr.msk.f32.vlgmr.msra.gmra.mrb[8].mxu1 %vm47_vm0, %v4533_v6 }
  0x2b   :  { %4295 = vmatpush3.bf16.msra.mxu0 %v4284_v19  ;;  %4299 = vmatpush3.bf16.msra.mxu1 %v4284_v19 }
  0x2c   :  { %3990 = vmatprep.mubr.msk.f32.mxu0 %vm47_vm0, %v4535_v7  ;;  %3997 = vmatprep.mubr.msk.f32.mxu1 %vm47_vm0, %v4537_v8 }
  0x2d   :  { %4301 = vmatprep.subr.bf16.mxu0 %v4284_v19  ;;  %4305 = vmatprep.subr.bf16.mxu1 %v4284_v19 }
  0x2e   :  { %3991 = vmatmul.mubr.msk.f32.vlgmr.msra.gmra.mrb[10].mxu0 %vm47_vm0, %v4543_v9  ;;  %3998 = vmatmul.mubr.msk.f32.vlgmr.msra.gmra.mrb[10].mxu1 %vm47_vm0, %v4545_v10 }
  0x2f   :  { %4303 = vmatpush3.bf16.msra.mxu0 %v4284_v19  ;;  %4307 = vmatpush3.bf16.msra.mxu1 %v4284_v19 }
  0x30   :  { %4004 = vmatprep.mubr.msk.f32.mxu0 %vm47_vm0, %v4551_v11  ;;  %4011 = vmatprep.mubr.msk.f32.mxu1 %vm47_vm0, %v4553_v12 }
  0x31   :  { %4309 = vmatprep.subr.bf16.mxu0 %v4284_v19  ;;  %4313 = vmatprep.subr.bf16.mxu1 %v4284_v19 }
  0x32   :  { %4005 = vmatmul.mubr.msk.f32.vlgmr.msra.gmra.mrb[12].mxu0 %vm47_vm0, %v4565_v15  ;;  %4012 = vmatmul.mubr.msk.f32.vlgmr.msra.gmra.mrb[12].mxu1 %vm47_vm0, %v4567_v16 }
  0x33   :  { %4311 = vmatpush3.bf16.msra.mxu0 %v4284_v19  ;;  %4315 = vmatpush3.bf16.msra.mxu1 %v4284_v19 }
  0x34   :  { %4018 = vmatprep.mubr.msk.f32.mxu0 %vm47_vm0, %v4573_v17  ;;  %4025 = vmatprep.mubr.msk.f32.mxu1 %vm47_vm0, %v4575_v18 }
  0x35   :  { %4317 = vmatprep.subr.bf16.mxu0 %v4316_v24  ;;  %4321 = vmatprep.subr.bf16.mxu1 %v4316_v24 }
  0x36   :  { %4019 = vmatmul.mubr.msk.f32.vlgmr.msra.gmra.mrb[14].mxu0 %vm47_vm0, %v4581_v20  ;;  %4026 = vmatmul.mubr.msk.f32.vlgmr.msra.gmra.mrb[14].mxu1 %vm47_vm0, %v4583_v21 }
  0x37   :  { %4319 = vmatpush3.bf16.msra.mxu0 %v4316_v24  ;;  %4323 = vmatpush3.bf16.msra.mxu1 %v4316_v24 }
  0x38   :  { %4032 = vmatprep.mubr.msk.f32.mxu0 %vm47_vm0, %v4523_v2  ;;  %4039 = vmatprep.mubr.msk.f32.mxu1 %vm47_vm0, %v4527_v4 }
  0x39   :  { %4325 = vmatprep.subr.bf16.mxu0 %v4316_v24  ;;  %4329 = vmatprep.subr.bf16.mxu1 %v4316_v24 }
  0x3a   :  { %4033 = vmatmul.mubr.msk.f32.vlgmr.msra.gmra.mrb[16].mxu0 %vm47_vm0, %v4531_v5  ;;  %4040 = vmatmul.mubr.msk.f32.vlgmr.msra.gmra.mrb[16].mxu1 %vm47_vm0, %v4533_v6 }
  0x3b   :  { %4327 = vmatpush3.bf16.msra.mxu0 %v4316_v24  ;;  %4331 = vmatpush3.bf16.msra.mxu1 %v4316_v24 }
  0x3c   :  { %4046 = vmatprep.mubr.msk.f32.mxu0 %vm47_vm0, %v4535_v7  ;;  %4053 = vmatprep.mubr.msk.f32.mxu1 %vm47_vm0, %v4537_v8 }
  0x3d   :  { %4333 = vmatprep.subr.bf16.mxu0 %v4316_v24  ;;  %4337 = vmatprep.subr.bf16.mxu1 %v4316_v24 }
  0x3e   :  { %4047 = vmatmul.mubr.msk.f32.vlgmr.msra.gmra.mrb[18].mxu0 %vm47_vm0, %v4543_v9  ;;  %4054 = vmatmul.mubr.msk.f32.vlgmr.msra.gmra.mrb[18].mxu1 %vm47_vm0, %v4545_v10 }
  0x3f   :  { %4335 = vmatpush3.bf16.msra.mxu0 %v4316_v24  ;;  %4339 = vmatpush3.bf16.msra.mxu1 %v4316_v24 }
  0x40   :  { %4060 = vmatprep.mubr.msk.f32.mxu0 %vm47_vm0, %v4551_v11  ;;  %4067 = vmatprep.mubr.msk.f32.mxu1 %vm47_vm0, %v4553_v12 }
  0x41   :  { %4341 = vmatprep.subr.bf16.mxu0 %v4316_v24  ;;  %4345 = vmatprep.subr.bf16.mxu1 %v4316_v24 }
  0x42   :  { %4061 = vmatmul.mubr.msk.f32.vlgmr.msra.gmra.mrb[20].mxu0 %vm47_vm0, %v4565_v15  ;;  %4068 = vmatmul.mubr.msk.f32.vlgmr.msra.gmra.mrb[20].mxu1 %vm47_vm0, %v4567_v16 }
  0x43   :  { %4343 = vmatpush3.bf16.msra.mxu0 %v4316_v24  ;;  %4347 = vmatpush3.bf16.msra.mxu1 %v4316_v24 }
  0x44   :  { %4074 = vmatprep.mubr.msk.f32.mxu0 %vm47_vm0, %v4573_v17  ;;  %4081 = vmatprep.mubr.msk.f32.mxu1 %vm47_vm0, %v4575_v18 }
  0x45   :  { %4348 = vmatprep.subr.bf16.mxu0 %v4478_v25  ;;  %4351 = vmatprep.subr.bf16.mxu1 %v4478_v25 }
  0x46   :  { %4075 = vmatmul.mubr.msk.f32.vlgmr.msra.gmra.mrb[22].mxu0 %vm47_vm0, %v4581_v20  ;;  %4082 = vmatmul.mubr.msk.f32.vlgmr.msra.gmra.mrb[22].mxu1 %vm47_vm0, %v4583_v21 }
  0x47   :  { %4088 = vmatprep.mubr.msk.f32.mxu0 %vm4479_vm1, %v4480_v26  ;;  %4095 = vmatprep.mubr.msk.f32.mxu1 %vm4479_vm1, %v4480_v26 }
  0xed   :  { %v3922_v27 = vpop.f32.mrb[0].mxu0  ;;  %v3929_v28 = vpop.f32.mrb[0].mxu1 }
  0xee   :  { %v120_v29 = vpop.f32.mrb[1].mxu0  ;;  %v201_v30 = vpop.f32.mrb[1].mxu1 }
  0xf1   :  { %v3936_v31 = vpop.f32.mrb[2].mxu0  ;;  %v3943_v32 = vpop.f32.mrb[2].mxu1 }
  0xf2   :  { %v282_v33 = vpop.f32.mrb[3].mxu0  ;;  %v363_v34 = vpop.f32.mrb[3].mxu1 }
  0xf5   :  { %v4669_v35 = vpop.f32.mrb[4].mxu0  ;;  %v4671_v36 = vpop.f32.mrb[4].mxu1 }
  0xf6   :  { %v4673_v37 = vpop.f32.mrb[5].mxu0  ;;  %v4675_v38 = vpop.f32.mrb[5].mxu1 }
  0xf9   :  { %v4677_v39 = vpop.f32.mrb[6].mxu0  ;;  %v4679_v40 = vpop.f32.mrb[6].mxu1 }
  0xfa   :  { %v4681_v41 = vpop.f32.mrb[7].mxu0  ;;  %v4683_v42 = vpop.f32.mrb[7].mxu1 }
  0xfd   :  { %v3978_v43 = vpop.f32.mrb[8].mxu0  ;;  %v3985_v44 = vpop.f32.mrb[8].mxu1 }
  0xfe   :  { %v1300_v45 = vmax.f32 %v3922_v27, %v3978_v43  ;;  %v1302_v46 = vmax.f32 %v3929_v28, %v3985_v44  ;;  %v765_v47 = vpop.f32.mrb[9].mxu0  ;;  %v840_v48 = vpop.f32.mrb[9].mxu1 }
  0xff   :  { %v1299_v49 = vmax.f32 %v120_v29, %v765_v47  ;;  %v1301_v50 = vmax.f32 %v201_v30, %v840_v48 }
 0x101   :  { %v3992_v51 = vpop.f32.mrb[10].mxu0  ;;  %v3999_v52 = vpop.f32.mrb[10].mxu1 }
 0x102   :  { %v1304_v53 = vmax.f32 %v3936_v31, %v3992_v51  ;;  %v1306_v54 = vmax.f32 %v3943_v32, %v3999_v52  ;;  %v915_v55 = vpop.f32.mrb[11].mxu0  ;;  %v990_v56 = vpop.f32.mrb[11].mxu1  ;;  %v1934_v31 = vld [vmem:[%s4857_s2] sm:$0xff] }
 0x103   :  { %v1303_v57 = vmax.f32 %v282_v33, %v915_v55  ;;  %v1305_v58 = vmax.f32 %v363_v34, %v990_v56  ;;  %v3739_v55 = vld [vmem:[%s4857_s2 + $0x10] sm:$0xff] }
 0x105   :  { %v4006_v59 = vpop.f32.mrb[12].mxu0  ;;  %v4013_v60 = vpop.f32.mrb[12].mxu1 }
 0x106   :  { %v1308_v61 = vmax.f32 %v4669_v35, %v4006_v59  ;;  %v1310_v62 = vmax.f32 %v4671_v36, %v4013_v60  ;;  %v1065_v63 = vpop.f32.mrb[13].mxu0  ;;  %v1140_v0 = vpop.f32.mrb[13].mxu1 }
 0x107   :  { %v1307_v1 = vmax.f32 %v4673_v37, %v1065_v63  ;;  %v1309_v2 = vmax.f32 %v4675_v38, %v1140_v0 }
 0x109   :  { %v4020_v3 = vpop.f32.mrb[14].mxu0  ;;  %v4027_v4 = vpop.f32.mrb[14].mxu1 }
 0x10a   :  { %v1312_v5 = vmax.f32 %v4677_v39, %v4020_v3  ;;  %v1314_v6 = vmax.f32 %v4679_v40, %v4027_v4  ;;  %v1215_v7 = vpop.f32.mrb[15].mxu0  ;;  %v1290_v8 = vpop.f32.mrb[15].mxu1 }
 0x10b   :  { %v1311_v9 = vmax.f32 %v4681_v41, %v1215_v7  ;;  %v1313_v10 = vmax.f32 %v4683_v42, %v1290_v8 }
 0x10d   :  { %v4034_v11 = vpop.f32.mrb[16].mxu0  ;;  %v4041_v12 = vpop.f32.mrb[16].mxu1 }
 0x10e   :  { %v1919_v13 = vmax.f32 %v1300_v45, %v4034_v11  ;;  %v1921_v14 = vmax.f32 %v1302_v46, %v4041_v12  ;;  %v1384_v15 = vpop.f32.mrb[17].mxu0  ;;  %v1459_v16 = vpop.f32.mrb[17].mxu1 }
 0x10f   :  { %v1918_v17 = vmax.f32 %v1299_v49, %v1384_v15  ;;  %v1920_v18 = vmax.f32 %v1301_v50, %v1459_v16 }
 0x111   :  { %v4693_v19 = vpack.c.bf16 %v1919_v13, %v1918_v17  ;;  %v4695_v20 = vpack.c.bf16 %v1921_v14, %v1920_v18  ;;  %v4048_v21 = vpop.f32.mrb[18].mxu0  ;;  %v4055_v22 = vpop.f32.mrb[18].mxu1 }
 0x112   :  { %v1923_v23 = vmax.f32 %v1304_v53, %v4048_v21  ;;  %v1925_v24 = vmax.f32 %v1306_v54, %v4055_v22  ;;  %v1534_v27 = vpop.f32.mrb[19].mxu0  ;;  %v1609_v28 = vpop.f32.mrb[19].mxu1  ;;  %v3730_v54 = vld [vmem:[%s4857_s2 + $0x8] sm:$0xff]  ;;  %s4481_s2 = smov [#allocation5]  }
 0x113   :  { %v1922_v29 = vmax.f32 %v1303_v57, %v1534_v27  ;;  %v1924_v30 = vmax.f32 %v1305_v58, %v1609_v28  ;;  %4350 = vmatpush3.bf16.msra.mxu0 %v4693_v19  ;;  %4353 = vmatpush3.bf16.msra.mxu1 %v4695_v20  ;;  %s3658_s15 = sshll.u32 %s4481_s2, 4  ;;  %s3659_s15 = int_to_ptr.vmem [resolvable:$true] %s3658_s15 }
 0x114   :  { %4354 = vmatprep.subr.bf16.mxu0 %v4478_v25  ;;  %4357 = vmatprep.subr.bf16.mxu1 %v4478_v25  ;;  %s4449_s16 = scalar_lea.vmem %s3659_s15, 1024  ;;  %p4454_p9 = scmp.lt.s32.totalorder %s3659_s15, %s3659_s15 }
 0x115   :  { %v4704_v32 = vpack.c.bf16 %v1923_v23, %v1922_v29  ;;  %v4706_v33 = vpack.c.bf16 %v1925_v24, %v1924_v30  ;;  %v4062_v34 = vpop.f32.mrb[20].mxu0  ;;  %v4069_v35 = vpop.f32.mrb[20].mxu1  ;;  %p4450_p8 = scmp.ne.s32.totalorder %s3659_s15, %s4449_s16  ;;  %p4455_p10 = scmp.lt.s32.totalorder %s4449_s16, %s4449_s16 }
 0x116   :  { %v1927_v36 = vmax.f32 %v1308_v61, %v4062_v34  ;;  %v1929_v37 = vmax.f32 %v1310_v62, %v4069_v35  ;;  %v1684_v38 = vpop.f32.mrb[21].mxu0  ;;  %v1759_v39 = vpop.f32.mrb[21].mxu1  ;;  %4089 = vmatmul.mubr.msk.f32.vlgmr.msra.gmra.mrb[24].mxu0 %vm47_vm0, %v1934_v31  ;;  %4096 = vmatmul.mubr.msk.f32.vlgmr.msra.gmra.mrb[24].mxu1 %vm47_vm0, %v1934_v31 }
 0x117   :  { %v1926_v40 = vmax.f32 %v1307_v1, %v1684_v38  ;;  %v1928_v41 = vmax.f32 %v1309_v2, %v1759_v39  ;;  %4356 = vmatpush3.bf16.msra.mxu0 %v4704_v32  ;;  %4359 = vmatpush3.bf16.msra.mxu1 %v4706_v33  ;;  %p4456_p11 = por %p4455_p10, %p4454_p9 }
 0x118   :  { %4102 = vmatprep.mubr.msk.f32.mxu0 %vm4479_vm1, %v4480_v26  ;;  %4109 = vmatprep.mubr.msk.f32.mxu1 %vm4479_vm1, %v4480_v26 }
 0x119   :  { %v4716_v42 = vpack.c.bf16 %v1927_v36, %v1926_v40  ;;  %v4718_v43 = vpack.c.bf16 %v1929_v37, %v1928_v41  ;;  %v4076_v44 = vpop.f32.mrb[22].mxu0  ;;  %v4083_v45 = vpop.f32.mrb[22].mxu1  ;;  %4360 = vmatprep.subr.bf16.mxu0 %v4478_v25  ;;  %4363 = vmatprep.subr.bf16.mxu1 %v4478_v25  ;;  %p4457_p12 = pnand %p4456_p11, %p4450_p8 }
 0x11a   :  { %v1931_v46 = vmax.f32 %v1312_v5, %v4076_v44  ;;  %v1933_v47 = vmax.f32 %v1314_v6, %v4083_v45  ;;  %v1834_v48 = vpop.f32.mrb[23].mxu0  ;;  %v1909_v49 = vpop.f32.mrb[23].mxu1  ;;  %4103 = vmatmul.mubr.msk.f32.vlgmr.msra.gmra.mrb[26].mxu0 %vm47_vm0, %v1934_v31  ;;  %4110 = vmatmul.mubr.msk.f32.vlgmr.msra.gmra.mrb[26].mxu1 %vm47_vm0, %v1934_v31 }
 0x11b   :  { %v1930_v50 = vmax.f32 %v1311_v9, %v1834_v48  ;;  %v1932_v51 = vmax.f32 %v1313_v10, %v1909_v49  ;;  %4362 = vmatpush3.bf16.msra.mxu0 %v4716_v42  ;;  %4365 = vmatpush3.bf16.msra.mxu1 %v4718_v43 }
 0x11c   :  { %4116 = vmatprep.mubr.msk.f32.mxu0 %vm4479_vm1, %v4480_v26  ;;  %4123 = vmatprep.mubr.msk.f32.mxu1 %vm4479_vm1, %v4480_v26 }
 0x11d   :  { %v4730_v52 = vpack.c.bf16 %v1931_v46, %v1930_v50  ;;  %v4732_v53 = vpack.c.bf16 %v1933_v47, %v1932_v51  ;;  %4366 = vmatprep.subr.bf16.mxu0 %v4478_v25  ;;  %4369 = vmatprep.subr.bf16.mxu1 %v4478_v25 }
 0x11e   :  { %4117 = vmatmul.mubr.msk.f32.vlgmr.msra.gmra.mrb[28].mxu0 %vm47_vm0, %v1934_v31  ;;  %4124 = vmatmul.mubr.msk.f32.vlgmr.msra.gmra.mrb[28].mxu1 %vm47_vm0, %v1934_v31 }
 0x11f   :  { %4368 = vmatpush3.bf16.msra.mxu0 %v4730_v52  ;;  %4371 = vmatpush3.bf16.msra.mxu1 %v4732_v53 }
 0x120   :  { %4130 = vmatprep.mubr.msk.f32.mxu0 %vm4479_vm1, %v4480_v26  ;;  %4137 = vmatprep.mubr.msk.f32.mxu1 %vm4479_vm1, %v4480_v26 }
 0x121   :  { %4372 = vmatprep.subr.bf16.mxu0 %v4478_v25  ;;  %4375 = vmatprep.subr.bf16.mxu1 %v4478_v25 }
 0x122   :  { %4131 = vmatmul.mubr.msk.f32.vlgmr.msra.gmra.mrb[30].mxu0 %vm47_vm0, %v1934_v31  ;;  %4138 = vmatmul.mubr.msk.f32.vlgmr.msra.gmra.mrb[30].mxu1 %vm47_vm0, %v1934_v31 }
 0x123   :  { %4374 = vmatpush3.bf16.msra.mxu0 %v4693_v19  ;;  %4377 = vmatpush3.bf16.msra.mxu1 %v4695_v20 }
 0x124   :  { %4144 = vmatprep.mubr.msk.f32.mxu0 %vm4479_vm1, %v4480_v26  ;;  %4151 = vmatprep.mubr.msk.f32.mxu1 %vm4479_vm1, %v4480_v26 }
 0x125   :  { %4378 = vmatprep.subr.bf16.mxu0 %v4478_v25  ;;  %4381 = vmatprep.subr.bf16.mxu1 %v4478_v25 }
 0x126   :  { %4145 = vmatmul.mubr.msk.f32.vlgmr.msra.gmra.mrb[32].mxu0 %vm47_vm0, %v3730_v54  ;;  %4152 = vmatmul.mubr.msk.f32.vlgmr.msra.gmra.mrb[32].mxu1 %vm47_vm0, %v3730_v54 }
 0x127   :  { %4380 = vmatpush3.bf16.msra.mxu0 %v4704_v32  ;;  %4383 = vmatpush3.bf16.msra.mxu1 %v4706_v33 }
 0x128   :  { %4158 = vmatprep.mubr.msk.f32.mxu0 %vm4479_vm1, %v4480_v26  ;;  %4165 = vmatprep.mubr.msk.f32.mxu1 %vm4479_vm1, %v4480_v26 }
 0x129   :  { %4384 = vmatprep.subr.bf16.mxu0 %v4478_v25  ;;  %4387 = vmatprep.subr.bf16.mxu1 %v4478_v25 }
 0x12a   :  { %4159 = vmatmul.mubr.msk.f32.vlgmr.msra.gmra.mrb[34].mxu0 %vm47_vm0, %v3730_v54  ;;  %4166 = vmatmul.mubr.msk.f32.vlgmr.msra.gmra.mrb[34].mxu1 %vm47_vm0, %v3730_v54 }
 0x12b   :  { %4386 = vmatpush3.bf16.msra.mxu0 %v4716_v42  ;;  %4389 = vmatpush3.bf16.msra.mxu1 %v4718_v43 }
 0x12c   :  { %4172 = vmatprep.mubr.msk.f32.mxu0 %vm4479_vm1, %v4480_v26  ;;  %4179 = vmatprep.mubr.msk.f32.mxu1 %vm4479_vm1, %v4480_v26 }
 0x12d   :  { %4390 = vmatprep.subr.bf16.mxu0 %v4478_v25  ;;  %4393 = vmatprep.subr.bf16.mxu1 %v4478_v25 }
 0x12e   :  { %4173 = vmatmul.mubr.msk.f32.vlgmr.msra.gmra.mrb[36].mxu0 %vm47_vm0, %v3730_v54  ;;  %4180 = vmatmul.mubr.msk.f32.vlgmr.msra.gmra.mrb[36].mxu1 %vm47_vm0, %v3730_v54 }
 0x12f   :  { %4392 = vmatpush3.bf16.msra.mxu0 %v4730_v52  ;;  %4395 = vmatpush3.bf16.msra.mxu1 %v4732_v53 }
 0x130   :  { %4186 = vmatprep.mubr.msk.f32.mxu0 %vm4479_vm1, %v4480_v26  ;;  %4193 = vmatprep.mubr.msk.f32.mxu1 %vm4479_vm1, %v4480_v26 }
 0x131   :  { %4396 = vmatprep.subr.bf16.mxu0 %v4478_v25  ;;  %4399 = vmatprep.subr.bf16.mxu1 %v4478_v25 }
 0x132   :  { %4187 = vmatmul.mubr.msk.f32.vlgmr.msra.gmra.mrb[38].mxu0 %vm47_vm0, %v3730_v54  ;;  %4194 = vmatmul.mubr.msk.f32.vlgmr.msra.gmra.mrb[38].mxu1 %vm47_vm0, %v3730_v54 }
 0x133   :  { %4398 = vmatpush3.bf16.msra.mxu0 %v4693_v19  ;;  %4401 = vmatpush3.bf16.msra.mxu1 %v4695_v20 }
 0x134   :  { %4200 = vmatprep.mubr.msk.f32.mxu0 %vm4479_vm1, %v4480_v26  ;;  %4207 = vmatprep.mubr.msk.f32.mxu1 %vm4479_vm1, %v4480_v26 }
 0x135   :  { %4402 = vmatprep.subr.bf16.mxu0 %v4478_v25  ;;  %4405 = vmatprep.subr.bf16.mxu1 %v4478_v25 }
 0x136   :  { %4201 = vmatmul.mubr.msk.f32.vlgmr.msra.gmra.mrb[40].mxu0 %vm47_vm0, %v3739_v55  ;;  %4208 = vmatmul.mubr.msk.f32.vlgmr.msra.gmra.mrb[40].mxu1 %vm47_vm0, %v3739_v55 }
 0x137   :  { %4404 = vmatpush3.bf16.msra.mxu0 %v4704_v32  ;;  %4407 = vmatpush3.bf16.msra.mxu1 %v4706_v33 }
 0x138   :  { %4214 = vmatprep.mubr.msk.f32.mxu0 %vm4479_vm1, %v4480_v26  ;;  %4221 = vmatprep.mubr.msk.f32.mxu1 %vm4479_vm1, %v4480_v26 }
 0x139   :  { %4408 = vmatprep.subr.bf16.mxu0 %v4478_v25  ;;  %4411 = vmatprep.subr.bf16.mxu1 %v4478_v25 }
 0x13a   :  { %4215 = vmatmul.mubr.msk.f32.vlgmr.msra.gmra.mrb[42].mxu0 %vm47_vm0, %v3739_v55  ;;  %4222 = vmatmul.mubr.msk.f32.vlgmr.msra.gmra.mrb[42].mxu1 %vm47_vm0, %v3739_v55 }
 0x13b   :  { %4410 = vmatpush3.bf16.msra.mxu0 %v4716_v42  ;;  %4413 = vmatpush3.bf16.msra.mxu1 %v4718_v43 }
 0x13c   :  { %4228 = vmatprep.mubr.msk.f32.mxu0 %vm4479_vm1, %v4480_v26  ;;  %4235 = vmatprep.mubr.msk.f32.mxu1 %vm4479_vm1, %v4480_v26 }
 0x13d   :  { %4414 = vmatprep.subr.bf16.mxu0 %v4478_v25  ;;  %4417 = vmatprep.subr.bf16.mxu1 %v4478_v25 }
 0x13e   :  { %4229 = vmatmul.mubr.msk.f32.vlgmr.msra.gmra.mrb[44].mxu0 %vm47_vm0, %v3739_v55  ;;  %4236 = vmatmul.mubr.msk.f32.vlgmr.msra.gmra.mrb[44].mxu1 %vm47_vm0, %v3739_v55 }
 0x13f   :  { %4416 = vmatpush3.bf16.msra.mxu0 %v4730_v52  ;;  %4419 = vmatpush3.bf16.msra.mxu1 %v4732_v53 }
 0x140   :  { %4242 = vmatprep.mubr.msk.f32.mxu0 %vm4479_vm1, %v4480_v26  ;;  %4249 = vmatprep.mubr.msk.f32.mxu1 %vm4479_vm1, %v4480_v26 }
 0x142   :  { %4243 = vmatmul.mubr.msk.f32.vlgmr.msra.gmra.mrb[46].mxu0 %vm47_vm0, %v3739_v55  ;;  %4250 = vmatmul.mubr.msk.f32.vlgmr.msra.gmra.mrb[46].mxu1 %vm47_vm0, %v3739_v55 }
 0x1e9   :  { %v2004_v56 = vpop.f32.mrb[24].mxu0  ;;  %v2074_v25 = vpop.f32.mrb[24].mxu1 }
 0x1ea   :  { %v4090_v57 = vpop.f32.mrb[25].mxu0  ;;  %v4097_v58 = vpop.f32.mrb[25].mxu1 }
 0x1ed   :  { %v2144_v59 = vpop.f32.mrb[26].mxu0  ;;  %v2214_v60 = vpop.f32.mrb[26].mxu1 }
 0x1ee   :  { %v4104_v61 = vpop.f32.mrb[27].mxu0  ;;  %v4111_v62 = vpop.f32.mrb[27].mxu1 }
 0x1f1   :  { %v2284_v63 = vpop.f32.mrb[28].mxu0  ;;  %v2354_v0 = vpop.f32.mrb[28].mxu1 }
 0x1f2   :  { %v4118_v1 = vpop.f32.mrb[29].mxu0  ;;  %v4125_v2 = vpop.f32.mrb[29].mxu1 }
 0x1f5   :  { %v2424_v3 = vpop.f32.mrb[30].mxu0  ;;  %v2494_v4 = vpop.f32.mrb[30].mxu1 }
 0x1f6   :  { %v4132_v5 = vpop.f32.mrb[31].mxu0  ;;  %v4139_v26 = vpop.f32.mrb[31].mxu1 }
 0x1f9   :  { %v2569_v6 = vpop.f32.mrb[32].mxu0  ;;  %v2639_v7 = vpop.f32.mrb[32].mxu1 }
 0x1fa   :  { %v3063_v8 = vmax.f32 %v2004_v56, %v2569_v6  ;;  %v3064_v9 = vmax.f32 %v2074_v25, %v2639_v7  ;;  %v4146_v10 = vpop.f32.mrb[33].mxu0  ;;  %v4153_v11 = vpop.f32.mrb[33].mxu1 }
 0x1fd   :  { %v2709_v12 = vpop.f32.mrb[34].mxu0  ;;  %v2779_v13 = vpop.f32.mrb[34].mxu1 }
 0x1fe   :  { %v3065_v14 = vmax.f32 %v2144_v59, %v2709_v12  ;;  %v3066_v15 = vmax.f32 %v2214_v60, %v2779_v13  ;;  %v4160_v16 = vpop.f32.mrb[35].mxu0  ;;  %v4167_v17 = vpop.f32.mrb[35].mxu1 }
 0x201   :  { %v2849_v18 = vpop.f32.mrb[36].mxu0  ;;  %v2919_v19 = vpop.f32.mrb[36].mxu1 }
 0x202   :  { %v3067_v20 = vmax.f32 %v2284_v63, %v2849_v18  ;;  %v3068_v21 = vmax.f32 %v2354_v0, %v2919_v19  ;;  %v4174_v22 = vpop.f32.mrb[37].mxu0  ;;  %v4181_v23 = vpop.f32.mrb[37].mxu1 }
 0x205   :  { %v2989_v24 = vpop.f32.mrb[38].mxu0  ;;  %v3059_v27 = vpop.f32.mrb[38].mxu1 }
 0x206   :  { %v3069_v28 = vmax.f32 %v2424_v3, %v2989_v24  ;;  %v3070_v29 = vmax.f32 %v2494_v4, %v3059_v27  ;;  %v4188_v30 = vpop.f32.mrb[39].mxu0  ;;  %v4195_v31 = vpop.f32.mrb[39].mxu1 }
 0x209   :  { %v3142_v32 = vpop.f32.mrb[40].mxu0  ;;  %v3212_v33 = vpop.f32.mrb[40].mxu1 }
 0x20a   :  { %v3636_v34 = vmax.f32 %v3063_v8, %v3142_v32  ;;  %v3637_v35 = vmax.f32 %v3064_v9, %v3212_v33  ;;  %v4202_v36 = vpop.f32.mrb[41].mxu0  ;;  %v4209_v37 = vpop.f32.mrb[41].mxu1 }
 0x20c   :  { %3645 = vst.msk [vmem:[#allocation5] sm:$0xff] %vm3644_vm2, %v3636_v34  ;;  %3646 = vst.msk [vmem:[#allocation5 + $0x8] sm:$0xff] %vm3644_vm2, %v3637_v35 }
 0x20d   :  { %v3282_v38 = vpop.f32.mrb[42].mxu0  ;;  %v3352_v39 = vpop.f32.mrb[42].mxu1 }
 0x20e   :  { %v3638_v40 = vmax.f32 %v3065_v14, %v3282_v38  ;;  %v3639_v41 = vmax.f32 %v3066_v15, %v3352_v39  ;;  %v4216_v42 = vpop.f32.mrb[43].mxu0  ;;  %v4223_v43 = vpop.f32.mrb[43].mxu1 }
 0x210   :  { %3647 = vst.msk [vmem:[#allocation5 + $0x10] sm:$0xff] %vm3644_vm2, %v3638_v40  ;;  %3648 = vst.msk [vmem:[#allocation5 + $0x18] sm:$0xff] %vm3644_vm2, %v3639_v41 }
 0x211   :  { %v3422_v44 = vpop.f32.mrb[44].mxu0  ;;  %v3492_v45 = vpop.f32.mrb[44].mxu1 }
 0x212   :  { %v3640_v46 = vmax.f32 %v3067_v20, %v3422_v44  ;;  %v3641_v47 = vmax.f32 %v3068_v21, %v3492_v45  ;;  %v4230_v48 = vpop.f32.mrb[45].mxu0  ;;  %v4237_v49 = vpop.f32.mrb[45].mxu1 }
 0x214   :  { %3649 = vst.msk [vmem:[#allocation5 + $0x20] sm:$0xff] %vm3644_vm2, %v3640_v46  ;;  %3650 = vst.msk [vmem:[#allocation5 + $0x28] sm:$0xff] %vm3644_vm2, %v3641_v47 }
 0x215   :  { %v3562_v50 = vpop.f32.mrb[46].mxu0  ;;  %v3632_v51 = vpop.f32.mrb[46].mxu1 }
 0x216   :  { %v3642_v52 = vmax.f32 %v3069_v28, %v3562_v50  ;;  %v3643_v53 = vmax.f32 %v3070_v29, %v3632_v51  ;;  %v4244_v54 = vpop.f32.mrb[47].mxu0  ;;  %v4251_v55 = vpop.f32.mrb[47].mxu1 }
 0x218   :  { %3651 = vst.msk [vmem:[#allocation5 + $0x30] sm:$0xff] %vm3644_vm2, %v3642_v52  ;;  %3652 = vst.msk [vmem:[#allocation5 + $0x38] sm:$0xff] %vm3644_vm2, %v3643_v53 }
 0x219   :  { %4460 = shalt.err (!%p4457_p12)
}
 0x21a   :  { %s4461_s19 = scalar_lea.hbm %s4858_s3, 1024 }
 0x21b   :  { %p4462_p13 = scmp.ne.s32.totalorder %s4858_s3, %s4461_s19  ;;  %p4465_p0 = scmp.lt.u32.totalorder %s4461_s19, %s4858_s3 }
 0x21d   :  { %p4467_p1 = pnand %p4465_p0, %p4462_p13 }
 0x21f   :  { %4470 = shalt.err (!%p4467_p1)
}
 0x220   :  { %3664 = dma.vmem_to_hbm [thread:$0]  %s3659_s15, 1024, %s4858_s3, [#allocation4], %s4476_s22, %s4476_s22, %s4477_s23  }
 0x221   :  { %4473 = dma.done.wait [#allocation4], 1024  }
 0x222   :  { %4474 = vsyncadd [#allocation4], 4294966272 }
 0x223   :  { %3668 = vsyncpa [#allocation3], 1 }
 0x224   :  { %3669 = vsyncpa [#allocation4], 1 }

</bundles_post_ra>
